<compile_context>
chip_gen: v6e
topology: v6e:2x2x1
jax: 0.10.0
libtpu: 0.0.40
codegen_flags: <defaults>
</compile_context>

<pallas_src>
import functools

import jax
import jax.numpy as jnp
from jax import lax
from jax.experimental import pallas as pl
from jax.experimental.pallas import tpu as pltpu


def _cross_attn_kernel(x1_ref, x2_ref, wq_t_ref, bq_ref, wkv_t_ref, bkv_ref,
                       o_ref, *, d_pad):
    x1 = x1_ref[...]                      # (Bb, TS1, Dp)
    x2 = x2_ref[...]                      # (Bb, S2,  Dp)

    # Query projection: attention scale is already folded into wq_t / bq on the host,
    # and the weight is pre-transposed -> plain contraction on the last dim.
    q = lax.dot_general(x1, wq_t_ref[...],
                        (((2,), (0,)), ((), ())),
                        preferred_element_type=jnp.float32) + bq_ref[...]

    # Fused K/V projection from a single x2 matmul: (Bb, S2, 2*Dp).
    kv = lax.dot_general(x2, wkv_t_ref[...],
                         (((2,), (0,)), ((), ())),
                         preferred_element_type=jnp.float32) + bkv_ref[...]
    k = kv[:, :, :d_pad]                  # lane-aligned slices (Dp is a multiple of 128)
    v = kv[:, :, d_pad:]

    # Attention scores: contract feature dims directly (no k transpose).
    s = lax.dot_general(q, k, (((2,), (2,)), ((0,), (0,))),
                        preferred_element_type=jnp.float32)     # (Bb, TS1, S2)

    # Numerically-stable softmax; normalization deferred to the output.
    m = jnp.max(s, axis=-1, keepdims=True)
    p = jnp.exp(s - m)
    l = jnp.sum(p, axis=-1, keepdims=True)                      # (Bb, TS1, 1)

    o = lax.dot_general(p, v, (((2,), (1,)), ((0,), (0,))),
                        preferred_element_type=jnp.float32)     # (Bb, TS1, Dp)
    # Exact reciprocal keeps f32-level accuracy (approx=True would use the EUP
    # slot at reduced precision -- enable if tolerance allows).
    o_ref[...] = (o * pl.reciprocal(l)).astype(o_ref.dtype)


def cross_attention(x1, x2, wq, bq, wk, bk, wv, bv):
    """x1: (B, S1, D), x2: (B, S2, D); weights: (D, D) torch layout (out, in); biases: (D,)."""
    B, S1, D = x1.shape
    _, S2, _ = x2.shape
    scale = float(D) ** (-0.5)

    # ---- host-side layout prep (done once, outside the kernel) -----------------
    Dp = ((D + 127) // 128) * 128         # lane-dense feature dim

    def pad_last(a):
        if Dp == D:
            return a
        pad = [(0, 0)] * (a.ndim - 1) + [(0, Dp - D)]
        return jnp.pad(a, pad)

    def prep_weight(w):                   # (D_out, D_in) -> transposed + padded (Dp, Dp)
        wt = w.T
        if Dp != D:
            wt = jnp.pad(wt, ((0, Dp - D), (0, Dp - D)))
        return wt

    x1p = pad_last(x1)
    x2p = pad_last(x2)

    # Fold the attention scale into the *query* projection (weight AND bias).
    wq_t = prep_weight(wq * scale)                              # (Dp, Dp)
    bq_p = pad_last((bq * scale).reshape(1, D))                 # (1, Dp)

    # Fuse K and V projections into one pre-transposed weight.
    wkv_t = jnp.concatenate([prep_weight(wk), prep_weight(wv)], axis=1)   # (Dp, 2Dp)
    bkv_p = jnp.concatenate([pad_last(bk.reshape(1, D)),
                             pad_last(bv.reshape(1, D))], axis=1)         # (1, 2Dp)

    # ---- tiling ----------------------------------------------------------------
    TS1 = S1 if S1 <= 256 else 256                # query-tile rows (full dim or mult of 8)
    Bb = min(B, max(1, 256 // TS1))               # pack batches so a step isn't tiny
    while B % Bb:                                 # pick a divisor of B (no masked edge tiles)
        Bb -= 1
    grid = (B // Bb, pl.cdiv(S1, TS1))

    kernel = functools.partial(_cross_attn_kernel, d_pad=Dp)

    out = pl.pallas_call(
        kernel,
        out_shape=jax.ShapeDtypeStruct((B, S1, Dp), x1.dtype),
        grid_spec=pltpu.PrefetchScalarGridSpec(
            num_scalar_prefetch=0,
            grid=grid,
            in_specs=[
                pl.BlockSpec((Bb, TS1, Dp), lambda b, i: (b, i, 0)),   # x1 tile
                pl.BlockSpec((Bb, S2, Dp), lambda b, i: (b, 0, 0)),    # x2 (full S2)
                pl.BlockSpec((Dp, Dp), lambda b, i: (0, 0)),           # Wq^T (scaled)
                pl.BlockSpec((1, Dp), lambda b, i: (0, 0)),            # bq (scaled)
                pl.BlockSpec((Dp, 2 * Dp), lambda b, i: (0, 0)),       # [Wk^T | Wv^T]
                pl.BlockSpec((1, 2 * Dp), lambda b, i: (0, 0)),        # [bk | bv]
            ],
            out_specs=pl.BlockSpec((Bb, TS1, Dp), lambda b, i: (b, i, 0)),
        ),
        compiler_params=pltpu.CompilerParams(
            dimension_semantics=("parallel", "parallel")),
    )(x1p, x2p, wq_t, bq_p, wkv_t, bkv_p)

    return out[..., :D] if Dp != D else out


def _reference(x1, x2, wq, bq, wk, bk, wv, bv):
    D = x1.shape[-1]
    scale = D ** (-0.5)
    q = x1 @ wq.T + bq
    k = x2 @ wk.T + bk
    v = x2 @ wv.T + bv
    attn = jnp.einsum("bqd,bkd->bqk", q, k) * scale
    attn = jax.nn.softmax(attn, axis=-1)
    return jnp.einsum("bqk,bkd->bqd", attn, v)


if __name__ == "__main__":
    B, S1, S2, D = 2, 8, 8, 32

    key = jax.random.PRNGKey(0)
    k_x1, k_x2, k_wq, k_bq, k_wk, k_bk, k_wv, k_bv = jax.random.split(key, 8)

    x1 = jax.random.normal(k_x1, (B, S1, D), dtype=jnp.float32)
    x2 = jax.random.normal(k_x2, (B, S2, D), dtype=jnp.float32)

    # Deterministic synthetic parameters (nn.Linear(dim, dim): weight (D, D), bias (D,))
    bound = 1.0 / (D ** 0.5)
    wq = jax.random.uniform(k_wq, (D, D), jnp.float32, -bound, bound)
    bq = jax.random.uniform(k_bq, (D,), jnp.float32, -bound, bound)
    wk = jax.random.uniform(k_wk, (D, D), jnp.float32, -bound, bound)
    bk = jax.random.uniform(k_bk, (D,), jnp.float32, -bound, bound)
    wv = jax.random.uniform(k_wv, (D, D), jnp.float32, -bound, bound)
    bv = jax.random.uniform(k_bv, (D,), jnp.float32, -bound, bound)

    out = cross_attention(x1, x2, wq, bq, wk, bk, wv, bv)
    out = jax.block_until_ready(out)

    ref = _reference(x1, x2, wq, bq, wk, bk, wv, bv)
    assert out.shape == (B, S1, D)
    assert jnp.allclose(out, ref, atol=1e-5, rtol=1e-5), "mismatch vs reference"

    print("KERNEL_OK")
</pallas_src>

<mosaic_0001>
module attributes {stable_mosaic.version = 11 : i64} {
  func.func @_cross_attn_kernel(%arg0: i32, %arg1: i32, %arg2: memref<2x8x128xf32, #tpu.memory_space<vmem>>, %arg3: memref<2x8x128xf32, #tpu.memory_space<vmem>>, %arg4: memref<128x128xf32, #tpu.memory_space<vmem>>, %arg5: memref<1x128xf32, #tpu.memory_space<vmem>>, %arg6: memref<128x256xf32, #tpu.memory_space<vmem>>, %arg7: memref<1x256xf32, #tpu.memory_space<vmem>>, %arg8: memref<2x8x128xf32, #tpu.memory_space<vmem>>) attributes {dimension_semantics = [#tpu.dimension_semantics<parallel>, #tpu.dimension_semantics<parallel>], iteration_bounds = array<i64: 1, 1>, scalar_prefetch = 0 : i64, scratch_operands = 0 : i64, tpu.core_type = #tpu.core_type<tc>, window_params = [{transform_indices = @transform_0, window_bounds = array<i64: 2, 8, 128>}, {transform_indices = @transform_1, window_bounds = array<i64: 2, 8, 128>}, {pipeline_mode = #tpu.pipeline_mode<synchronous>, transform_indices = @transform_2, window_bounds = array<i64: 128, 128>}, {pipeline_mode = #tpu.pipeline_mode<synchronous>, transform_indices = @transform_3, window_bounds = array<i64: 1, 128>}, {pipeline_mode = #tpu.pipeline_mode<synchronous>, transform_indices = @transform_4, window_bounds = array<i64: 128, 256>}, {pipeline_mode = #tpu.pipeline_mode<synchronous>, transform_indices = @transform_5, window_bounds = array<i64: 1, 256>}, {transform_indices = @transform_6, window_bounds = array<i64: 2, 8, 128>}]} {
    %c0 = arith.constant 0 : index
    %c0_0 = arith.constant 0 : index
    %c0_1 = arith.constant 0 : index
    %0 = vector.load %arg2[%c0, %c0_0, %c0_1] : memref<2x8x128xf32, #tpu.memory_space<vmem>>, vector<2x8x128xf32>
    %c0_2 = arith.constant 0 : index
    %c0_3 = arith.constant 0 : index
    %c0_4 = arith.constant 0 : index
    %1 = vector.load %arg3[%c0_2, %c0_3, %c0_4] : memref<2x8x128xf32, #tpu.memory_space<vmem>>, vector<2x8x128xf32>
    %c0_5 = arith.constant 0 : index
    %c0_6 = arith.constant 0 : index
    %2 = vector.load %arg4[%c0_5, %c0_6] : memref<128x128xf32, #tpu.memory_space<vmem>>, vector<128x128xf32>
    %cst = arith.constant dense<0.000000e+00> : vector<2x8x128xf32>
    %3 = tpu.matmul %0, %2, %cst {dimension_numbers = #tpu.dot_dimension_numbers<[2], [0], [0, 1], [1], [0, 0, 0, 1, 1, 1], [], []>} : vector<2x8x128xf32>, vector<128x128xf32>, vector<2x8x128xf32> -> vector<2x8x128xf32>
    %c0_7 = arith.constant 0 : index
    %c0_8 = arith.constant 0 : index
    %4 = vector.load %arg5[%c0_7, %c0_8] : memref<1x128xf32, #tpu.memory_space<vmem>>, vector<1x128xf32>
    %5 = vector.shape_cast %4 : vector<1x128xf32> to vector<1x1x128xf32>
    %6 = vector.broadcast %5 : vector<1x1x128xf32> to vector<2x8x128xf32>
    %7 = arith.addf %3, %6 : vector<2x8x128xf32>
    %c0_9 = arith.constant 0 : index
    %c0_10 = arith.constant 0 : index
    %8 = vector.load %arg6[%c0_9, %c0_10] : memref<128x256xf32, #tpu.memory_space<vmem>>, vector<128x256xf32>
    %cst_11 = arith.constant dense<0.000000e+00> : vector<2x8x256xf32>
    %9 = tpu.matmul %1, %8, %cst_11 {dimension_numbers = #tpu.dot_dimension_numbers<[2], [0], [0, 1], [1], [0, 0, 0, 1, 1, 1], [], []>} : vector<2x8x128xf32>, vector<128x256xf32>, vector<2x8x256xf32> -> vector<2x8x256xf32>
    %c0_12 = arith.constant 0 : index
    %c0_13 = arith.constant 0 : index
    %10 = vector.load %arg7[%c0_12, %c0_13] : memref<1x256xf32, #tpu.memory_space<vmem>>, vector<1x256xf32>
    %11 = vector.shape_cast %10 : vector<1x256xf32> to vector<1x1x256xf32>
    %12 = vector.broadcast %11 : vector<1x1x256xf32> to vector<2x8x256xf32>
    %13 = arith.addf %9, %12 : vector<2x8x256xf32>
    %14 = vector.extract_strided_slice %13 {offsets = [0, 0, 0], sizes = [2, 8, 128], strides = [1, 1, 1]} : vector<2x8x256xf32> to vector<2x8x128xf32>
    %15 = vector.extract_strided_slice %13 {offsets = [0, 0, 128], sizes = [2, 8, 128], strides = [1, 1, 1]} : vector<2x8x256xf32> to vector<2x8x128xf32>
    %cst_14 = arith.constant dense<0.000000e+00> : vector<2x8x8xf32>
    %16 = tpu.matmul %7, %14, %cst_14 {dimension_numbers = #tpu.dot_dimension_numbers<[2], [2], [1], [1], [0, 0, 0, 1, 1, 1], [0], [0]>} : vector<2x8x128xf32>, vector<2x8x128xf32>, vector<2x8x8xf32> -> vector<2x8x8xf32>
    %cst_15 = arith.constant dense<0xFF800000> : vector<2x8xf32>
    %17 = vector.multi_reduction <maximumf>, %16, %cst_15 [2] : vector<2x8x8xf32> to vector<2x8xf32>
    %18 = vector.shape_cast %17 : vector<2x8xf32> to vector<2x8x1xf32>
    %19 = vector.broadcast %18 : vector<2x8x1xf32> to vector<2x8x8xf32>
    %20 = arith.subf %16, %19 : vector<2x8x8xf32>
    %21 = math.exp %20 : vector<2x8x8xf32>
    %cst_16 = arith.constant dense<0.000000e+00> : vector<2x8xf32>
    %22 = vector.multi_reduction <add>, %21, %cst_16 [2] : vector<2x8x8xf32> to vector<2x8xf32>
    %23 = vector.shape_cast %22 : vector<2x8xf32> to vector<2x8x1xf32>
    %cst_17 = arith.constant dense<0.000000e+00> : vector<2x8x128xf32>
    %24 = tpu.matmul %21, %15, %cst_17 {dimension_numbers = #tpu.dot_dimension_numbers<[2], [1], [1], [2], [0, 0, 0, 1, 1, 2], [0], [0]>} : vector<2x8x8xf32>, vector<2x8x128xf32>, vector<2x8x128xf32> -> vector<2x8x128xf32>
    %25 = tpu.reciprocal %23 : vector<2x8x1xf32> -> vector<2x8x1xf32>
    %26 = vector.broadcast %25 : vector<2x8x1xf32> to vector<2x8x128xf32>
    %27 = arith.mulf %24, %26 : vector<2x8x128xf32>
    %c0_18 = arith.constant 0 : index
    %c0_19 = arith.constant 0 : index
    %c0_20 = arith.constant 0 : index
    %28 = vector.load %arg8[%c0_18, %c0_19, %c0_20] : memref<2x8x128xf32, #tpu.memory_space<vmem>>, vector<2x8x128xf32>
    tpu.vector_store %arg8[%c0_18, %c0_19, %c0_20], %27 {strides = array<i32>} : memref<2x8x128xf32, #tpu.memory_space<vmem>>, vector<2x8x128xf32>,
    return
  }
  func.func @transform_0(%arg0: i32, %arg1: i32) -> (i32, i32, i32) {
    %c0_i32 = arith.constant 0 : i32
    %c0_i32_0 = arith.constant 0 : i32
    return %arg0, %arg1, %c0_i32 : i32, i32, i32
  }
  func.func @transform_1(%arg0: i32, %arg1: i32) -> (i32, i32, i32) {
    %c0_i32 = arith.constant 0 : i32
    %c0_i32_0 = arith.constant 0 : i32
    %c0_i32_1 = arith.constant 0 : i32
    return %arg0, %c0_i32, %c0_i32_0 : i32, i32, i32
  }
  func.func @transform_2(%arg0: i32, %arg1: i32) -> (i32, i32) {
    %c0_i32 = arith.constant 0 : i32
    %c0_i32_0 = arith.constant 0 : i32
    %c0_i32_1 = arith.constant 0 : i32
    return %c0_i32, %c0_i32_0 : i32, i32
  }
  func.func @transform_3(%arg0: i32, %arg1: i32) -> (i32, i32) {
    %c0_i32 = arith.constant 0 : i32
    %c0_i32_0 = arith.constant 0 : i32
    %c0_i32_1 = arith.constant 0 : i32
    return %c0_i32, %c0_i32_0 : i32, i32
  }
  func.func @transform_4(%arg0: i32, %arg1: i32) -> (i32, i32) {
    %c0_i32 = arith.constant 0 : i32
    %c0_i32_0 = arith.constant 0 : i32
    %c0_i32_1 = arith.constant 0 : i32
    return %c0_i32, %c0_i32_0 : i32, i32
  }
  func.func @transform_5(%arg0: i32, %arg1: i32) -> (i32, i32) {
    %c0_i32 = arith.constant 0 : i32
    %c0_i32_0 = arith.constant 0 : i32
    %c0_i32_1 = arith.constant 0 : i32
    return %c0_i32, %c0_i32_0 : i32, i32
  }
  func.func @transform_6(%arg0: i32, %arg1: i32) -> (i32, i32, i32) {
    %c0_i32 = arith.constant 0 : i32
    %c0_i32_0 = arith.constant 0 : i32
    return %arg0, %arg1, %c0_i32 : i32, i32, i32
  }
}

</mosaic_0001>

<bundles_post_ra>
// kernel: tpu_custom_call.1
= control target key start
LH: loop header
LB: loop body
LE: loop exit
PB: predicated region body
PF: predicated region fallthrough
CT: control target
= control target key end

     0   :  { %11 = vsyncpa [#allocation3], 0  ;;  %s942_s0 = inlined_call_operand.hbm [shape: f32[2,8,128], index: 0, kind: input, shape index: {}]   ;;  %s943_s1 = inlined_call_operand.hbm [shape: f32[2,8,128], index: 1, kind: input, shape index: {}]   ;;  %s944_s2 = inlined_call_operand.hbm [shape: f32[128,128], index: 2, kind: input, shape index: {}]   ;;  %s945_s3 = inlined_call_operand.vmem [shape: f32[1,128], index: 3, kind: input, shape index: {}]   ;;  %s946_s4 = inlined_call_operand.hbm [shape: f32[128,256], index: 4, kind: input, shape index: {}]   ;;  %s947_s5 = inlined_call_operand.vmem [shape: f32[1,256], index: 5, kind: input, shape index: {}]   ;;  %s948_s6 = inlined_call_operand.hbm [shape: f32[2,8,128], index: 6, kind: output, shape index: {}]  }
   0x1   :  { %12 = vsyncpa [#allocation6], 0 }
   0x2   :  { %13 = vsyncpa [#allocation9], 0 }
   0x3   :  { %14 = vsyncpa [#allocation4], 0  ;;  %s843_s21 = smov [#allocation5]   ;;  %s844_s23 = smov [#allocation2]  }
   0x4   :  { %s32_s22 = sshll.u32 %s843_s21, 4  ;;  %s20_s24 = sshll.u32 %s844_s23, 4  ;;  %s33_s22 = int_to_ptr.vmem [resolvable:$true] %s32_s22  ;;  %s21_s24 = int_to_ptr.vmem [resolvable:$true] %s20_s24 }
   0x5   :  { %s743_s25 = scalar_lea.vmem %s33_s22, 256  ;;  %p748_p1 = scmp.lt.s32.totalorder %s33_s22, %s33_s22 }
   0x6   :  { %p744_p0 = scmp.ne.s32.totalorder %s33_s22, %s743_s25  ;;  %p749_p2 = scmp.lt.s32.totalorder %s743_s25, %s743_s25 }
   0x8   :  { %p750_p3 = por %p749_p2, %p748_p1 }
   0xa   :  { %p751_p4 = pnand %p750_p3, %p744_p0 }
   0xc   :  { %754 = shalt.err (!%p751_p4)
}
   0xd   :  { %s845_s26 = smov 128   ;;  %s846_s27 = smov 8  }
   0xe   :  { %38 = dma.hbm_to_vmem [thread:$0]  %s943_s1, 256, %s33_s22, [#allocation6], %s845_s26, %s845_s26, %s846_s27  }
   0xf   :  { %s763_s30 = scalar_lea.vmem %s21_s24, 256  ;;  %p768_p6 = scmp.lt.s32.totalorder %s21_s24, %s21_s24 }
  0x10   :  { %p764_p5 = scmp.ne.s32.totalorder %s21_s24, %s763_s30  ;;  %p769_p7 = scmp.lt.s32.totalorder %s763_s30, %s763_s30 }
  0x12   :  { %p770_p8 = por %p769_p7, %p768_p6 }
  0x14   :  { %p771_p9 = pnand %p770_p8, %p764_p5 }
  0x16   :  { %774 = shalt.err (!%p771_p9)
}
  0x17   :  { %26 = dma.hbm_to_vmem [thread:$0]  %s942_s0, 256, %s21_s24, [#allocation3], %s845_s26, %s845_s26, %s846_s27  }
  0x18   :  { %s847_s9 = smov [#allocation7]   ;;  %s848_s11 = smov [#allocation8]  }
  0x19   :  { %s44_s10 = sshll.u32 %s847_s9, 4  ;;  %s58_s12 = sshll.u32 %s848_s11, 4  ;;  %s45_s10 = int_to_ptr.vmem [resolvable:$true] %s44_s10  ;;  %s59_s12 = int_to_ptr.vmem [resolvable:$true] %s58_s12 }
  0x1a   :  { %s783_s1 = scalar_lea.vmem %s45_s10, 2048  ;;  %p788_p11 = scmp.lt.s32.totalorder %s45_s10, %s45_s10 }
  0x1b   :  { %p784_p10 = scmp.ne.s32.totalorder %s45_s10, %s783_s1  ;;  %p789_p12 = scmp.lt.s32.totalorder %s783_s1, %s783_s1 }
  0x1d   :  { %p790_p13 = por %p789_p12, %p788_p11 }
  0x1f   :  { %p791_p0 = pnand %p790_p13, %p784_p10 }
  0x21   :  { %794 = shalt.err (!%p791_p0)
}
  0x22   :  { %50 = dma.hbm_to_vmem [thread:$0]  %s944_s2, 2048, %s45_s10, [#allocation6], %s845_s26, %s845_s26, %s846_s27  }
  0x23   :  { %s803_s0 = scalar_lea.vmem %s59_s12, 4096  ;;  %p808_p2 = scmp.lt.s32.totalorder %s59_s12, %s59_s12 }
  0x24   :  { %p804_p1 = scmp.ne.s32.totalorder %s59_s12, %s803_s0  ;;  %p809_p3 = scmp.lt.s32.totalorder %s803_s0, %s803_s0 }
  0x26   :  { %p810_p4 = por %p809_p3, %p808_p2 }
  0x28   :  { %p811_p5 = pnand %p810_p4, %p804_p1 }
  0x2a   :  { %814 = shalt.err (!%p811_p5)
}
  0x2b   :  { %s849_s15 = smov 256   ;;  %s850_s16 = smov 16  }
  0x2c   :  { %64 = dma.hbm_to_vmem [thread:$0]  %s946_s4, 4096, %s59_s12, [#allocation9], %s849_s15, %s849_s15, %s850_s16  }
  0x2d   :  { %835 = dma.done.wait [#allocation3], 256  }
  0x2e   :  { %836 = vsyncadd [#allocation3], 4294967040 }
  0x2f   :  { %837 = dma.done.wait [#allocation6], 2304  }
  0x30   :  { %838 = vsyncadd [#allocation6], 4294964992 }
  0x31   :  { %839 = dma.done.wait [#allocation9], 4096  }
  0x32   :  { %840 = vsyncadd [#allocation9], 4294963200  ;;  %v851_v0 = vmov 0.0   ;;  %v98_v1 = vld [vmem:[#allocation7 + $0x78] sm:$0xff]  ;;  %v211_v3 = vld [vmem:[#allocation8 + $0xf0] sm:$0xff]  ;;  %vm852_vm0 = vmmov 0   ;;  %v215_v53 = vlaneseq }
  0x33   :  { %289 = vmatprep.mubr.f32.mxu1 %v851_v0  ;;  %v212_v2 = vld [vmem:[#allocation8 + $0xf8] sm:$0xff]  ;;  %661 = vmatprep.subr.mxu0 %v98_v1  ;;  %v97_v4 = vld [vmem:[#allocation7 + $0x70] sm:$0xff]  ;;  %v210_v5 = vld [vmem:[#allocation8 + $0xe8] sm:$0xff]  ;;  %vm442_vm1 = vcmask 64512  }
  0x34   :  { %225 = vmatprep.subr.mxu1 %v212_v2  ;;  %v209_v6 = vld [vmem:[#allocation8 + $0xe0] sm:$0xff]  ;;  %662 = vmatpush3.msra.mxu0 %v98_v1  ;;  %v96_v7 = vld [vmem:[#allocation7 + $0x68] sm:$0xff]  ;;  %v208_v8 = vld [vmem:[#allocation8 + $0xd8] sm:$0xff]  ;;  %v216_v54 = vshrl.u32 %v215_v53, 7 }
  0x35   :  { %226 = vmatpush1.msra.mxu1 %v211_v3  ;;  %663 = vmatprep.subr.mxu0 %v97_v4  ;;  %v207_v9 = vld [vmem:[#allocation8 + $0xd0] sm:$0xff]  ;;  %v95_v10 = vld [vmem:[#allocation7 + $0x60] sm:$0xff]  ;;  %v206_v11 = vld [vmem:[#allocation8 + $0xc8] sm:$0xff] }
  0x36   :  { %227 = vmatprep.subr.mxu1 %v210_v5  ;;  %664 = vmatpush3.msra.mxu0 %v97_v4  ;;  %v205_v12 = vld [vmem:[#allocation8 + $0xc0] sm:$0xff]  ;;  %v94_v13 = vld [vmem:[#allocation7 + $0x58] sm:$0xff]  ;;  %v203_v15 = vld [vmem:[#allocation8 + $0xb0] sm:$0xff]  ;;  %v217_v55 = vsub.s32 0, %v216_v54  ;;  %v221_v57 = vsub.s32 1, %v216_v54 }
  0x37   :  { %228 = vmatpush1.msra.mxu1 %v209_v6  ;;  %665 = vmatprep.subr.mxu0 %v96_v7  ;;  %v204_v14 = vld [vmem:[#allocation8 + $0xb8] sm:$0xff]  ;;  %v93_v16 = vld [vmem:[#allocation7 + $0x50] sm:$0xff]  ;;  %v202_v17 = vld [vmem:[#allocation8 + $0xa8] sm:$0xff] }
  0x38   :  { %229 = vmatprep.subr.mxu1 %v208_v8  ;;  %666 = vmatpush3.msra.mxu0 %v96_v7  ;;  %v201_v18 = vld [vmem:[#allocation8 + $0xa0] sm:$0xff]  ;;  %v92_v19 = vld [vmem:[#allocation7 + $0x48] sm:$0xff]  ;;  %v200_v20 = vld [vmem:[#allocation8 + $0x98] sm:$0xff] }
  0x39   :  { %230 = vmatpush1.msra.mxu1 %v207_v9  ;;  %667 = vmatprep.subr.mxu0 %v95_v10  ;;  %v199_v21 = vld [vmem:[#allocation8 + $0x90] sm:$0xff]  ;;  %v91_v22 = vld [vmem:[#allocation7 + $0x40] sm:$0xff]  ;;  %v198_v23 = vld [vmem:[#allocation8 + $0x88] sm:$0xff] }
  0x3a   :  { %231 = vmatprep.subr.mxu1 %v206_v11  ;;  %668 = vmatpush3.msra.mxu0 %v95_v10  ;;  %v197_v24 = vld [vmem:[#allocation8 + $0x80] sm:$0xff]  ;;  %v90_v25 = vld [vmem:[#allocation7 + $0x38] sm:$0xff]  ;;  %v195_v27 = vld [vmem:[#allocation8 + $0x70] sm:$0xff] }
  0x3b   :  { %232 = vmatpush1.msra.mxu1 %v205_v12  ;;  %669 = vmatprep.subr.mxu0 %v94_v13  ;;  %v196_v26 = vld [vmem:[#allocation8 + $0x78] sm:$0xff]  ;;  %v89_v28 = vld [vmem:[#allocation7 + $0x30] sm:$0xff]  ;;  %v194_v29 = vld [vmem:[#allocation8 + $0x68] sm:$0xff] }
  0x3c   :  { %233 = vmatprep.subr.mxu1 %v204_v14  ;;  %670 = vmatpush3.msra.mxu0 %v94_v13  ;;  %v193_v30 = vld [vmem:[#allocation8 + $0x60] sm:$0xff]  ;;  %v88_v31 = vld [vmem:[#allocation7 + $0x28] sm:$0xff]  ;;  %v192_v32 = vld [vmem:[#allocation8 + $0x58] sm:$0xff] }
  0x3d   :  { %234 = vmatpush1.msra.mxu1 %v203_v15  ;;  %671 = vmatprep.subr.mxu0 %v93_v16  ;;  %v191_v33 = vld [vmem:[#allocation8 + $0x50] sm:$0xff]  ;;  %v87_v34 = vld [vmem:[#allocation7 + $0x20] sm:$0xff]  ;;  %v190_v35 = vld [vmem:[#allocation8 + $0x48] sm:$0xff] }
  0x3e   :  { %235 = vmatprep.subr.mxu1 %v202_v17  ;;  %672 = vmatpush3.msra.mxu0 %v93_v16  ;;  %v189_v36 = vld [vmem:[#allocation8 + $0x40] sm:$0xff]  ;;  %v86_v37 = vld [vmem:[#allocation7 + $0x18] sm:$0xff]  ;;  %v187_v39 = vld [vmem:[#allocation8 + $0x30] sm:$0xff] }
  0x3f   :  { %236 = vmatpush1.msra.mxu1 %v201_v18  ;;  %673 = vmatprep.subr.mxu0 %v92_v19  ;;  %v188_v38 = vld [vmem:[#allocation8 + $0x38] sm:$0xff]  ;;  %v85_v40 = vld [vmem:[#allocation7 + $0x10] sm:$0xff]  ;;  %v186_v41 = vld [vmem:[#allocation8 + $0x28] sm:$0xff] }
  0x40   :  { %237 = vmatprep.subr.mxu1 %v200_v20  ;;  %674 = vmatpush3.msra.mxu0 %v92_v19  ;;  %v185_v42 = vld [vmem:[#allocation8 + $0x20] sm:$0xff]  ;;  %v84_v43 = vld [vmem:[#allocation7 + $0x8] sm:$0xff]  ;;  %v184_v44 = vld [vmem:[#allocation8 + $0x18] sm:$0xff] }
  0x41   :  { %238 = vmatpush1.msra.mxu1 %v199_v21  ;;  %675 = vmatprep.subr.mxu0 %v91_v22  ;;  %v183_v45 = vld [vmem:[#allocation8 + $0x10] sm:$0xff]  ;;  %v83_v46 = vld [vmem:[#allocation7] sm:$0xff]  ;;  %v182_v47 = vld [vmem:[#allocation8 + $0x8] sm:$0xff] }
  0x42   :  { %239 = vmatprep.subr.mxu1 %v198_v23  ;;  %676 = vmatpush3.msra.mxu0 %v91_v22  ;;  %v79_v48 = vld [vmem:[#allocation2] sm:$0xff]  ;;  %v80_v50 = vld [vmem:[#allocation2 + $0x8] sm:$0xff]  ;;  %v81_v51 = vld [vmem:[#allocation5] sm:$0xff] }
  0x43   :  { %240 = vmatpush1.msra.mxu1 %v197_v24  ;;  %677 = vmatprep.subr.mxu0 %v90_v25  ;;  %v181_v49 = vld [vmem:[#allocation8] sm:$0xff]  ;;  %v82_v52 = vld [vmem:[#allocation5 + $0x8] sm:$0xff] }
  0x44   :  { %241 = vmatprep.subr.mxu1 %v196_v26  ;;  %678 = vmatpush3.msra.mxu0 %v90_v25  ;;  %v213_v56 = vld [vmem:[%s947_s5] sm:$0x3] }
  0x45   :  { %242 = vmatpush1.msra.mxu1 %v195_v27  ;;  %679 = vmatprep.subr.mxu0 %v89_v28  ;;  %v218_v58 = vrot.slane %v213_v56, %v217_v55  ;;  %v632_v60 = vld [vmem:[%s945_s3] ss:$0 sm:$0xff]  ;;  %v222_v61 = vrot.slane %v213_v56, %v221_v57  ;;  %s853_s3 = smov [#allocation10]  }
  0x46   :  { %243 = vmatprep.subr.mxu1 %v194_v29  ;;  %680 = vmatpush3.msra.mxu0 %v89_v28  ;;  %s618_s5 = sshll.u32 %s853_s3, 4  ;;  %s619_s5 = int_to_ptr.vmem [resolvable:$true] %s618_s5 }
  0x47   :  { %244 = vmatpush1.msra.mxu1 %v193_v30  ;;  %681 = vmatprep.subr.mxu0 %v88_v31  ;;  %s815_s21 = scalar_lea.vmem %s619_s5, 256  ;;  %p820_p7 = scmp.lt.s32.totalorder %s619_s5, %s619_s5 }
  0x48   :  { %245 = vmatprep.subr.mxu1 %v192_v32  ;;  %682 = vmatpush3.msra.mxu0 %v88_v31  ;;  %p816_p6 = scmp.ne.s32.totalorder %s619_s5, %s815_s21  ;;  %p821_p8 = scmp.lt.s32.totalorder %s815_s21, %s815_s21 }
  0x49   :  { %246 = vmatpush1.msra.mxu1 %v191_v33  ;;  %683 = vmatprep.subr.mxu0 %v87_v34 }
  0x4a   :  { %247 = vmatprep.subr.mxu1 %v190_v35  ;;  %684 = vmatpush3.msra.mxu0 %v87_v34  ;;  %p822_p9 = por %p821_p8, %p820_p7 }
  0x4b   :  { %248 = vmatpush1.msra.mxu1 %v189_v36  ;;  %685 = vmatprep.subr.mxu0 %v86_v37 }
  0x4c   :  { %249 = vmatprep.subr.mxu1 %v188_v38  ;;  %686 = vmatpush3.msra.mxu0 %v86_v37  ;;  %p823_p10 = pnand %p822_p9, %p816_p6 }
  0x4d   :  { %250 = vmatpush1.msra.mxu1 %v187_v39  ;;  %687 = vmatprep.subr.mxu0 %v85_v40 }
  0x4e   :  { %251 = vmatprep.subr.mxu1 %v186_v41  ;;  %688 = vmatpush3.msra.mxu0 %v85_v40 }
  0x4f   :  { %252 = vmatpush1.msra.mxu1 %v185_v42  ;;  %689 = vmatprep.subr.mxu0 %v84_v43 }
  0x50   :  { %253 = vmatprep.subr.mxu1 %v184_v44  ;;  %690 = vmatpush3.msra.mxu0 %v84_v43 }
  0x51   :  { %254 = vmatpush1.msra.mxu1 %v183_v45  ;;  %691 = vmatprep.subr.mxu0 %v83_v46 }
  0x52   :  { %255 = vmatprep.subr.mxu1 %v182_v47  ;;  %692 = vmatpush3.msra.mxu0 %v83_v46 }
  0x53   :  { %693 = vmatprep.mubr.f32.mxu0 %v79_v48  ;;  %256 = vmatpush1.msra.mxu1 %v181_v49 }
  0x54   :  { %694 = vmatmul.mubr.f32.vlgmr.msra.gmra.mxu0 %v80_v50  ;;  %290 = vmatmul.mubr.f32.vlgmr.msra.gmra.mxu1 %v81_v51 }
  0x55   :  { %696 = vmatprep.subr.mxu0 %v851_v0  ;;  %295 = vmatprep.mubr.f32.mxu1 %v851_v0 }
  0x56   :  { %706 = vmatprep.subr.mxu1 %v851_v0  ;;  %698 = vmatprep.mubr.msk.f32.mxu0 %vm852_vm0, %v851_v0 }
  0x58   :  { %296 = vmatmul.mubr.f32.gmra.mxu1 %v82_v52 }
  0x59   :  { %708 = vmatprep.mubr.msk.f32.mxu1 %vm852_vm0, %v851_v0 }
 0x114   :  { %v695_v59 = vpop.f32.mrf.mxu0  ;;  %v291_v62 = vpop.f32.mrf.mxu1 }
 0x115   :  { %v292_v63 = vadd.f32 %v291_v62, %v218_v58  ;;  %v178_v8 = vadd.f32 %v695_v59, %v632_v60 }
 0x116   :  { %v172_v1 = vpop.f32.mrf.mxu0  ;;  %v293_v3 = vpop.f32.mrf.mxu1 }
 0x117   :  { %v173_v2 = vadd.f32 %v632_v60, %v172_v1  ;;  %v294_v4 = vadd.f32 %v293_v3, %v222_v61  ;;  %697 = vmatpush3.xpose.msra.mxu0 %v292_v63 }
 0x118   :  { %v297_v5 = vpop.f32.mrf.mxu1  ;;  %701 = vmatprep.subr.mxu0 %v851_v0 }
 0x119   :  { %v298_v6 = vadd.f32 %v297_v5, %v218_v58  ;;  %707 = vmatpush3.msra.mxu1 %v294_v4 }
 0x11a   :  { %v299_v7 = vpop.f32.mrf.mxu1  ;;  %699 = vmatmul.mubr.f32.vlgmr.msra.gmra.mxu0 %v173_v2 }
 0x11b   :  { %702 = vmatpush3.xpose.msra.mxu0 %v298_v6  ;;  %703 = vmatprep.mubr.msk.f32.mxu0 %vm852_vm0, %v851_v0  ;;  %v300_v9 = vadd.f32 %v299_v7, %v222_v61 }
 0x11c   :  { %711 = vmatprep.subr.mxu0 %v851_v0 }
 0x11e   :  { %704 = vmatmul.mubr.f32.vlgmr.msra.gmra.mxu0 %v178_v8 }
 0x11f   :  { %712 = vmatpush3.msra.mxu0 %v300_v9  ;;  %713 = vmatprep.mubr.msk.f32.mxu0 %vm852_vm0, %v851_v0 }
 0x1da   :  { %v368_v10 = vpop.f32.mrf.mxu0 }
 0x1db   :  { %v443_v11 = vsel %vm442_vm1, %v368_v10, -inf }
 0x1dc   :  { %444 = vmax.xlane.f32.xlu0 %v443_v11  ;;  %v700_v12 = vpop.f32.mrf.mxu0 }
 0x1de   :  { %v438_v13 = vpop.f32.mrf.mxu0 }
 0x1df   :  { %v446_v14 = vsel %vm442_vm1, %v438_v13, -inf }
 0x1e0   :  { %447 = vmax.xlane.f32.xlu0 %v446_v14  ;;  %v705_v15 = vpop.f32.mrf.mxu0 }
 0x265   :  { %v445_v16 = vpop.xlane.xlu0 %444 }
 0x266   :  { %v449_v17 = vsub.f32 %v368_v10, %v445_v16 }
 0x268   :  { %v451_v18 = vmul.f32 1.442695, %v449_v17 }
 0x269   :  { %v448_v19 = vpop.xlane.xlu0 %447 }
 0x26a   :  { %727 = vpow2.f32 %v451_v18  ;;  %v450_v20 = vsub.f32 %v438_v13, %v448_v19 }
 0x26c   :  { %v453_v21 = vmul.f32 1.442695, %v450_v20 }
 0x26e   :  { %729 = vpow2.f32 %v453_v21 }
 0x277   :  { %v728_v0 = vpop.eup %727 }
 0x278   :  { %709 = vmatmul.mubr.msk.f32.vlgmr.msra.gmra.mxu1 %vm442_vm1, %v728_v0  ;;  %v455_v22 = vsel %vm442_vm1, %v728_v0, 0.0 }
 0x279   :  { %456 = vadd.xlane.f32.xlu1 %v455_v22 }
 0x27b   :  { %v730_v23 = vpop.eup %729 }
 0x27c   :  { %714 = vmatmul.mubr.msk.f32.vlgmr.msra.gmra.mxu0 %vm442_vm1, %v730_v23  ;;  %v458_v24 = vsel %vm442_vm1, %v730_v23, 0.0 }
 0x27d   :  { %459 = vadd.xlane.f32.xlu1 %v458_v24 }
 0x302   :  { %v457_v25 = vpop.xlane.xlu1 %456 }
 0x303   :  { %731 = vrcp.f32 %v457_v25 }
 0x306   :  { %v460_v26 = vpop.xlane.xlu1 %459 }
 0x307   :  { %733 = vrcp.f32 %v460_v26 }
 0x310   :  { %v732_v27 = vpop.eup %731 }
 0x314   :  { %v734_v31 = vpop.eup %733 }
 0x338   :  { %v530_v28 = vpop.f32.mrf.mxu1 }
 0x339   :  { %v609_v29 = vmul.f32 %v732_v27, %v530_v28 }
 0x33a   :  { %v710_v30 = vpop.f32.mrf.mxu1 }
 0x33b   :  { %611 = vst [vmem:[#allocation10] sm:$0xff] %v609_v29 }
 0x33c   :  { %v603_v32 = vpop.f32.mrf.mxu0 }
 0x33d   :  { %v610_v33 = vmul.f32 %v734_v31, %v603_v32 }
 0x33e   :  { %v715_v34 = vpop.f32.mrf.mxu0 }
 0x33f   :  { %612 = vst [vmem:[#allocation10 + $0x8] sm:$0xff] %v610_v33 }
 0x340   :  { %826 = shalt.err (!%p823_p10)
}
 0x341   :  { %624 = dma.vmem_to_hbm [thread:$0]  %s619_s5, 256, %s948_s6, [#allocation4], %s845_s26, %s845_s26, %s846_s27  }
 0x342   :  { %841 = dma.done.wait [#allocation4], 256  }
 0x343   :  { %842 = vsyncadd [#allocation4], 4294967040 }
 0x344   :  { %628 = vsyncpa [#allocation3], 1 }
 0x345   :  { %629 = vsyncpa [#allocation6], 1 }
 0x346   :  { %630 = vsyncpa [#allocation9], 1 }
 0x347   :  { %631 = vsyncpa [#allocation4], 1 }

</bundles_post_ra>
